<compile_context>
chip_gen: v7x
topology: tpu7x:2x2x1
jax: 0.10.0
libtpu: 0.0.40
codegen_flags: <defaults>
</compile_context>

<pallas_src>
from functools import partial

import jax
import jax.numpy as jnp
from jax.experimental import pallas as pl
from jax.experimental.pallas import tpu as pltpu


_VMEM_LIMIT_BYTES = 32 * 1024 * 1024   # raise scoped VMEM (v5e default is 16 MiB)
_TILE_VMEM_BUDGET = 8 * 1024 * 1024    # per-kernel tile budget, safe headroom on v7x


# --------------------------------------------------------------------------- #
# Pallas kernel
# --------------------------------------------------------------------------- #
def _loc_block_kernel(x_ref, w_ref, o_ref, *, scale):
    """One grid step: BP patches as a single batched matmul on the MXU.

    x_ref: (BP, Np, K)   w_ref: (BP, K, O)   o_ref: (BP, Np, O)
    """
    # For realistic configs (K, O >= 256) on v6e, cast x/w to bf16 here and keep
    # f32 accumulation; left in f32 since the toy matmuls are MXU-starved either
    # way and v5e has no bf16 VPU for the epilogue.
    y = jnp.einsum("pnk,pko->pno", x_ref[...], w_ref[...],
                   preferred_element_type=jnp.float32)
    o_ref[...] = jnp.maximum(y * scale, 0.0).astype(o_ref.dtype)


def _choose_patch_block(pp, n, k, o, itemsize, budget=_TILE_VMEM_BUDGET):
    """Largest divisor BP of pp whose three double-buffered operands fit `budget`.

    Budget rule (perf review, v7x): 2 * (BP*N*K + BP*K*O + BP*N*O) * itemsize
    must leave headroom under the scoped VMEM limit.
    """
    best = 1
    for bp in range(1, pp + 1):
        if pp % bp:
            continue
        need = 2 * (bp * n * k + bp * k * o + bp * n * o) * itemsize
        if need <= budget:
            best = bp
    return best


# --------------------------------------------------------------------------- #
# One-time weight preparation (hoisted out of the forward path)
# --------------------------------------------------------------------------- #
def prepare_loc_block_weights(w, filter_size):
    """(1, O, C, P, P, f*f) -> (P*P, K, O) with K ordered (c, fh, fw).

    Done once at init so the weight transpose is not re-materialized in HBM on
    every forward call.
    """
    _, out_ch, in_ch, num_p, _, ff = w.shape
    assert ff == filter_size * filter_size
    return w[0].transpose(2, 3, 1, 4, 0).reshape(num_p * num_p, in_ch * ff, out_ch)


# --------------------------------------------------------------------------- #
# Forward wrapper
# --------------------------------------------------------------------------- #
def loc_block_2d_nt(x, w_unf, filter_size):
    """LocBlock2dNT forward.  x: (N, C, D, D) NCHW, w_unf: (P*P, K, O).

    Returns (N, O, P, P), identical to the PyTorch module.
    """
    N, C, D, _ = x.shape
    f = filter_size
    P = D // f
    PP = P * P
    K = C * f * f
    O = w_unf.shape[-1]
    assert w_unf.shape == (PP, K, O)

    # NCHW -> patch-major (P*P, N, K), K ordered (c, fh, fw).  This is the same
    # materialization torch's unfold().reshape() performs (one activation HBM
    # round trip).
    # TODO(synk): fold this gather into the BlockSpec index_map on the reshaped
    # (N, C, P, f, P, f) view (no pre-kernel transpose) once the required
    # in-kernel (c, fh, q, fw) re-layout lowers cleanly in Mosaic.
    x_unf = (x.reshape(N, C, P, f, P, f)
              .transpose(2, 4, 0, 1, 3, 5)
              .reshape(PP, N, K))

    # Pad batch to a multiple of 8 sublanes (perf review: N=2 wastes 6/8 of
    # every vector op / MXU row).  Padded rows are zeros and are sliced off.
    Np = ((N + 7) // 8) * 8
    if Np != N:
        x_unf = jnp.pad(x_unf, ((0, 0), (0, Np - N), (0, 0)))

    scale = 1.0 / float((f * f * C) ** 0.5)
    bp = _choose_patch_block(PP, Np, K, O, x.dtype.itemsize)

    out = pl.pallas_call(
        partial(_loc_block_kernel, scale=scale),
        out_shape=jax.ShapeDtypeStruct((PP, Np, O), x.dtype),
        grid=(PP // bp,),
        in_specs=[
            pl.BlockSpec((bp, Np, K), lambda pb: (pb, 0, 0)),
            pl.BlockSpec((bp, K, O), lambda pb: (pb, 0, 0)),
        ],
        out_specs=pl.BlockSpec((bp, Np, O), lambda pb: (pb, 0, 0)),
        compiler_params=pltpu.CompilerParams(
            dimension_semantics=("parallel",),
            vmem_limit_bytes=_VMEM_LIMIT_BYTES,
        ),
    )(x_unf, w_unf)

    # (P*P, Np, O) -> (N, O, P, P): the module's NCHW output contract.
    # TODO(synk): with small O this layout is not lane-dense; the full fix
    # (emit (N, BP*O) slabs and permute the *consumer*, e.g. readout beta rows)
    # needs the downstream layer, which is outside this module's scope.
    out = out[:, :N, :]
    return out.reshape(P, P, N, O).transpose(2, 3, 0, 1)


# --------------------------------------------------------------------------- #
# Pure-JAX reference (mirrors the PyTorch forward exactly)
# --------------------------------------------------------------------------- #
def _ref_loc_block(x, w, filter_size):
    N, C, D, _ = x.shape
    f = filter_size
    P = D // f
    xp = (x.reshape(N, C, P, f, P, f)
           .transpose(0, 1, 2, 4, 3, 5)
           .reshape(N, C, P, P, f * f))
    y = jnp.einsum("ncpqk,ocpqk->nopq", xp, w[0])
    return jax.nn.relu(y / (f * f * C) ** 0.5)


# --------------------------------------------------------------------------- #
if __name__ == "__main__":
    # Small config consistent with the module:
    #   batch N=2, in_channels=4, dimension=16, filter_size=4
    #   -> num_patches P=4 (P*P=16 patches), out_channels O=8, K = 4*4*4 = 64
    N, C, D, f, O = 2, 4, 16, 4, 8
    P = D // f

    key = jax.random.PRNGKey(0)
    k_x, k_w = jax.random.split(key)
    x = jax.random.normal(k_x, (N, C, D, D), dtype=jnp.float32)
    w = jax.random.normal(k_w, (1, O, C, P, P, f * f), dtype=jnp.float32)

    w_unf = prepare_loc_block_weights(w, f)              # one-time, at init
    fwd = jax.jit(partial(loc_block_2d_nt, filter_size=f))

    out = jax.block_until_ready(fwd(x, w_unf))
    ref = jax.block_until_ready(_ref_loc_block(x, w, f))

    assert out.shape == (N, O, P, P), out.shape
    assert jnp.allclose(out, ref, rtol=1e-5, atol=1e-5), float(jnp.abs(out - ref).max())

    print("KERNEL_OK")
</pallas_src>

<mosaic_0001>
module attributes {stable_mosaic.version = 11 : i64} {
  func.func @_loc_block_kernel(%arg0: i32, %arg1: memref<16x8x64xf32, #tpu.memory_space<vmem>>, %arg2: memref<16x64x8xf32, #tpu.memory_space<vmem>>, %arg3: memref<16x8x8xf32, #tpu.memory_space<vmem>>) attributes {dimension_semantics = [#tpu.dimension_semantics<parallel>], iteration_bounds = array<i64: 1>, scalar_prefetch = 0 : i64, scratch_operands = 0 : i64, tpu.core_type = #tpu.core_type<tc>, window_params = [{transform_indices = @transform_0, window_bounds = array<i64: 16, 8, 64>}, {transform_indices = @transform_1, window_bounds = array<i64: 16, 64, 8>}, {transform_indices = @transform_2, window_bounds = array<i64: 16, 8, 8>}]} {
    %c0 = arith.constant 0 : index
    %c0_0 = arith.constant 0 : index
    %c0_1 = arith.constant 0 : index
    %0 = vector.load %arg1[%c0, %c0_0, %c0_1] : memref<16x8x64xf32, #tpu.memory_space<vmem>>, vector<16x8x64xf32>
    %c0_2 = arith.constant 0 : index
    %c0_3 = arith.constant 0 : index
    %c0_4 = arith.constant 0 : index
    %1 = vector.load %arg2[%c0_2, %c0_3, %c0_4] : memref<16x64x8xf32, #tpu.memory_space<vmem>>, vector<16x64x8xf32>
    "tpu.trace_start"() <{level = 10 : i32, message = "pnk,pko->pno"}> : () -> ()
    %cst = arith.constant dense<0.000000e+00> : vector<16x8x8xf32>
    %2 = tpu.matmul %0, %1, %cst {dimension_numbers = #tpu.dot_dimension_numbers<[2], [1], [1], [2], [0, 0, 0, 1, 1, 2], [0], [0]>} : vector<16x8x64xf32>, vector<16x64x8xf32>, vector<16x8x8xf32> -> vector<16x8x8xf32>
    "tpu.trace_stop"() : () -> ()
    %cst_5 = arith.constant 1.250000e-01 : f32
    %3 = vector.broadcast %cst_5 : f32 to vector<16x8x8xf32>
    %4 = arith.mulf %2, %3 : vector<16x8x8xf32>
    %cst_6 = arith.constant 0.000000e+00 : f32
    %5 = vector.broadcast %cst_6 : f32 to vector<16x8x8xf32>
    %6 = arith.maximumf %4, %5 : vector<16x8x8xf32>
    %c0_7 = arith.constant 0 : index
    %c0_8 = arith.constant 0 : index
    %c0_9 = arith.constant 0 : index
    %7 = vector.load %arg3[%c0_7, %c0_8, %c0_9] : memref<16x8x8xf32, #tpu.memory_space<vmem>>, vector<16x8x8xf32>
    tpu.vector_store %arg3[%c0_7, %c0_8, %c0_9], %6 {strides = array<i32>} : memref<16x8x8xf32, #tpu.memory_space<vmem>>, vector<16x8x8xf32>,
    return
  }
  func.func @transform_0(%arg0: i32) -> (i32, i32, i32) {
    %c0_i32 = arith.constant 0 : i32
    %c0_i32_0 = arith.constant 0 : i32
    %c0_i32_1 = arith.constant 0 : i32
    return %arg0, %c0_i32, %c0_i32_0 : i32, i32, i32
  }
  func.func @transform_1(%arg0: i32) -> (i32, i32, i32) {
    %c0_i32 = arith.constant 0 : i32
    %c0_i32_0 = arith.constant 0 : i32
    %c0_i32_1 = arith.constant 0 : i32
    return %arg0, %c0_i32, %c0_i32_0 : i32, i32, i32
  }
  func.func @transform_2(%arg0: i32) -> (i32, i32, i32) {
    %c0_i32 = arith.constant 0 : i32
    %c0_i32_0 = arith.constant 0 : i32
    %c0_i32_1 = arith.constant 0 : i32
    return %arg0, %c0_i32, %c0_i32_0 : i32, i32, i32
  }
}

</mosaic_0001>

<bundles_post_ra>
// kernel: loc_block_2d_nt.1
= control target key start
LH: loop header
LB: loop body
LE: loop exit
PB: predicated region body
PF: predicated region fallthrough
CT: control target
= control target key end

     0   :  { %v2036_v0 = vmov 0.0|0.0   ;;  %vm2037_vm0 = vmmov 0   ;;  %v2038_v8 = vmov 0.0   ;;  %vm155_vm1 = vcmask 523264   ;;  %s2662_s1 = inlined_call_operand.vmem [shape: f32[16,64,8], index: 1, kind: input, shape index: {}]   ;;  %s2663_s0 = inlined_call_operand.vmem [shape: f32[16,8,64], index: 0, kind: input, shape index: {}]   ;;  %s2664_s2 = inlined_call_operand.vmem [shape: f32[16,8,8], index: 2, kind: output, shape index: {}]  }
   0x1   :  { %1841 = vmatprep.subr.bf16.mxu0 %v2036_v0  ;;  %1853 = vmatprep.subr.bf16.mxu1 %v2036_v0  ;;  %v27_v1 = vld [vmem:[%s2662_s1] sm:$0xff]  ;;  %v28_v2 = vld [vmem:[%s2662_s1 + $0x8] sm:$0xff]  ;;  %v29_v6 = vld [vmem:[%s2662_s1 + $0x10] sm:$0xff]  ;;  %vm1356_vm2 = vcmask 64512  }
   0x2   :  { %v35_v3 = vld [vmem:[%s2662_s1 + $0x40] sm:$0xff]  ;;  %v1842_v4 = vpack.c.bf16 %v28_v2, %v27_v1  ;;  %v36_v5 = vld [vmem:[%s2662_s1 + $0x48] sm:$0xff]  ;;  %v30_v7 = vld [vmem:[%s2662_s1 + $0x18] sm:$0xff]  ;;  %1553 = vmatprep.mubr.msk.f32.mxu0 %vm2037_vm0, %v2038_v8  ;;  %1572 = vmatprep.mubr.msk.f32.mxu1 %vm2037_vm0, %v2038_v8 }
   0x3   :  { %v1854_v9 = vpack.c.bf16 %v36_v5, %v35_v3  ;;  %v37_v10 = vld [vmem:[%s2662_s1 + $0x50] sm:$0xff]  ;;  %v38_v11 = vld [vmem:[%s2662_s1 + $0x58] sm:$0xff]  ;;  %v1845_v12 = vpack.c.bf16 %v30_v7, %v29_v6  ;;  %v31_v14 = vld [vmem:[%s2662_s1 + $0x20] sm:$0xff] }
   0x4   :  { %1843 = vmatpush3.bf16.msra.mxu0 %v1842_v4  ;;  %v1857_v13 = vpack.c.bf16 %v38_v11, %v37_v10  ;;  %v32_v15 = vld [vmem:[%s2662_s1 + $0x28] sm:$0xff]  ;;  %v39_v16 = vld [vmem:[%s2662_s1 + $0x60] sm:$0xff]  ;;  %v33_v20 = vld [vmem:[%s2662_s1 + $0x30] sm:$0xff] }
   0x5   :  { %1855 = vmatpush3.bf16.msra.mxu1 %v1854_v9  ;;  %1844 = vmatprep.subr.bf16.mxu0 %v2036_v0  ;;  %v40_v17 = vld [vmem:[%s2662_s1 + $0x68] sm:$0xff]  ;;  %v1848_v18 = vpack.c.bf16 %v32_v15, %v31_v14  ;;  %v34_v21 = vld [vmem:[%s2662_s1 + $0x38] sm:$0xff]  ;;  %v41_v22 = vld [vmem:[%s2662_s1 + $0x70] sm:$0xff] }
   0x6   :  { %1856 = vmatprep.subr.bf16.mxu1 %v2036_v0  ;;  %v1860_v19 = vpack.c.bf16 %v40_v17, %v39_v16  ;;  %v42_v23 = vld [vmem:[%s2662_s1 + $0x78] sm:$0xff]  ;;  %v1851_v24 = vpack.c.bf16 %v34_v21, %v33_v20  ;;  %v43_v26 = vld [vmem:[%s2662_s1 + $0x80] sm:$0xff]  ;;  %v44_v27 = vld [vmem:[%s2662_s1 + $0x88] sm:$0xff] }
   0x7   :  { %v1863_v25 = vpack.c.bf16 %v42_v23, %v41_v22  ;;  %v51_v28 = vld [vmem:[%s2662_s1 + $0xc0] sm:$0xff]  ;;  %v52_v29 = vld [vmem:[%s2662_s1 + $0xc8] sm:$0xff]  ;;  %v1866_v31 = vpack.c.bf16 %v44_v27, %v43_v26  ;;  %v45_v34 = vld [vmem:[%s2662_s1 + $0x90] sm:$0xff] }
   0x8   :  { %1846 = vmatpush3.bf16.msra.mxu0 %v1845_v12  ;;  %v11_v30 = vld [vmem:[%s2663_s0] sm:$0xff]  ;;  %v12_v32 = vld [vmem:[%s2663_s0 + $0x8] sm:$0xff]  ;;  %v1878_v33 = vpack.c.bf16 %v52_v29, %v51_v28  ;;  %v46_v35 = vld [vmem:[%s2662_s1 + $0x98] sm:$0xff] }
   0x9   :  { %1858 = vmatpush3.bf16.msra.mxu1 %v1857_v13  ;;  %1847 = vmatprep.subr.bf16.mxu0 %v2036_v0  ;;  %v53_v36 = vld [vmem:[%s2662_s1 + $0xd0] sm:$0xff]  ;;  %v54_v37 = vld [vmem:[%s2662_s1 + $0xd8] sm:$0xff]  ;;  %v1869_v38 = vpack.c.bf16 %v46_v35, %v45_v34  ;;  %v47_v40 = vld [vmem:[%s2662_s1 + $0xa0] sm:$0xff] }
   0xa   :  { %1859 = vmatprep.subr.bf16.mxu1 %v2036_v0  ;;  %v1881_v39 = vpack.c.bf16 %v54_v37, %v53_v36  ;;  %v48_v41 = vld [vmem:[%s2662_s1 + $0xa8] sm:$0xff]  ;;  %v55_v42 = vld [vmem:[%s2662_s1 + $0xe0] sm:$0xff]  ;;  %v49_v46 = vld [vmem:[%s2662_s1 + $0xb0] sm:$0xff] }
   0xb   :  { %v56_v43 = vld [vmem:[%s2662_s1 + $0xe8] sm:$0xff]  ;;  %v1872_v44 = vpack.c.bf16 %v48_v41, %v47_v40  ;;  %v50_v47 = vld [vmem:[%s2662_s1 + $0xb8] sm:$0xff]  ;;  %v57_v48 = vld [vmem:[%s2662_s1 + $0xf0] sm:$0xff] }
   0xc   :  { %1849 = vmatpush3.bf16.msra.mxu0 %v1848_v18  ;;  %v1884_v45 = vpack.c.bf16 %v56_v43, %v55_v42  ;;  %v58_v49 = vld [vmem:[%s2662_s1 + $0xf8] sm:$0xff]  ;;  %v1875_v50 = vpack.c.bf16 %v50_v47, %v49_v46  ;;  %v59_v52 = vld [vmem:[%s2662_s1 + $0x100] sm:$0xff]  ;;  %v60_v53 = vld [vmem:[%s2662_s1 + $0x108] sm:$0xff] }
   0xd   :  { %1861 = vmatpush3.bf16.msra.mxu1 %v1860_v19  ;;  %1850 = vmatprep.subr.bf16.mxu0 %v2036_v0  ;;  %v1887_v51 = vpack.c.bf16 %v58_v49, %v57_v48  ;;  %v67_v54 = vld [vmem:[%s2662_s1 + $0x140] sm:$0xff]  ;;  %v68_v55 = vld [vmem:[%s2662_s1 + $0x148] sm:$0xff]  ;;  %v13_v56 = vld [vmem:[%s2663_s0 + $0x10] sm:$0xff]  ;;  %v1890_v57 = vpack.c.bf16 %v60_v53, %v59_v52 }
   0xe   :  { %1862 = vmatprep.subr.bf16.mxu1 %v2036_v0  ;;  %v14_v58 = vld [vmem:[%s2663_s0 + $0x18] sm:$0xff]  ;;  %v1902_v59 = vpack.c.bf16 %v68_v55, %v67_v54  ;;  %v61_v60 = vld [vmem:[%s2662_s1 + $0x110] sm:$0xff]  ;;  %v63_v3 = vld [vmem:[%s2662_s1 + $0x120] sm:$0xff] }
   0xf   :  { %v62_v61 = vld [vmem:[%s2662_s1 + $0x118] sm:$0xff]  ;;  %v69_v62 = vld [vmem:[%s2662_s1 + $0x150] sm:$0xff]  ;;  %v64_v4 = vld [vmem:[%s2662_s1 + $0x128] sm:$0xff] }
  0x10   :  { %1852 = vmatpush3.bf16.msra.mxu0 %v1851_v24  ;;  %v70_v63 = vld [vmem:[%s2662_s1 + $0x158] sm:$0xff]  ;;  %v1893_v1 = vpack.c.bf16 %v62_v61, %v61_v60  ;;  %v71_v5 = vld [vmem:[%s2662_s1 + $0x160] sm:$0xff]  ;;  %v72_v6 = vld [vmem:[%s2662_s1 + $0x168] sm:$0xff]  ;;  %v1896_v7 = vpack.c.bf16 %v64_v4, %v63_v3 }
  0x11   :  { %1864 = vmatpush3.bf16.msra.mxu1 %v1863_v25  ;;  %1865 = vmatprep.subr.bf16.mxu0 %v2036_v0  ;;  %v1905_v2 = vpack.c.bf16 %v70_v63, %v69_v62  ;;  %v1908_v9 = vpack.c.bf16 %v72_v6, %v71_v5  ;;  %v65_v10 = vld [vmem:[%s2662_s1 + $0x130] sm:$0xff]  ;;  %v66_v11 = vld [vmem:[%s2662_s1 + $0x138] sm:$0xff]  ;;  %v75_v16 = vld [vmem:[%s2662_s1 + $0x180] sm:$0xff] }
  0x12   :  { %1877 = vmatprep.subr.bf16.mxu1 %v2036_v0  ;;  %v73_v12 = vld [vmem:[%s2662_s1 + $0x170] sm:$0xff]  ;;  %v74_v13 = vld [vmem:[%s2662_s1 + $0x178] sm:$0xff]  ;;  %v1899_v14 = vpack.c.bf16 %v66_v11, %v65_v10  ;;  %v76_v17 = vld [vmem:[%s2662_s1 + $0x188] sm:$0xff] }
  0x13   :  { %1554 = vmatmul.mubr.msk.f32.vlgmr.msra.gmra.mrb[0].mxu0 %vm155_vm1, %v11_v30  ;;  %v1911_v15 = vpack.c.bf16 %v74_v13, %v73_v12  ;;  %v83_v18 = vld [vmem:[%s2662_s1 + $0x1c0] sm:$0xff]  ;;  %v84_v19 = vld [vmem:[%s2662_s1 + $0x1c8] sm:$0xff]  ;;  %v1914_v21 = vpack.c.bf16 %v76_v17, %v75_v16  ;;  %v77_v24 = vld [vmem:[%s2662_s1 + $0x190] sm:$0xff] }
  0x14   :  { %1573 = vmatmul.mubr.msk.f32.vlgmr.msra.gmra.mrb[0].mxu1 %vm155_vm1, %v12_v32  ;;  %1867 = vmatpush3.bf16.msra.mxu0 %v1866_v31  ;;  %v15_v20 = vld [vmem:[%s2663_s0 + $0x20] sm:$0xff]  ;;  %v16_v22 = vld [vmem:[%s2663_s0 + $0x28] sm:$0xff]  ;;  %v1926_v23 = vpack.c.bf16 %v84_v19, %v83_v18  ;;  %v78_v25 = vld [vmem:[%s2662_s1 + $0x198] sm:$0xff] }
  0x15   :  { %1879 = vmatpush3.bf16.msra.mxu1 %v1878_v33  ;;  %1868 = vmatprep.subr.bf16.mxu0 %v2036_v0  ;;  %v85_v26 = vld [vmem:[%s2662_s1 + $0x1d0] sm:$0xff]  ;;  %v86_v27 = vld [vmem:[%s2662_s1 + $0x1d8] sm:$0xff]  ;;  %v1917_v28 = vpack.c.bf16 %v78_v25, %v77_v24  ;;  %v79_v30 = vld [vmem:[%s2662_s1 + $0x1a0] sm:$0xff] }
  0x16   :  { %1880 = vmatprep.subr.bf16.mxu1 %v2036_v0  ;;  %1591 = vmatprep.mubr.msk.f32.mxu0 %vm2037_vm0, %v2038_v8  ;;  %v1929_v29 = vpack.c.bf16 %v86_v27, %v85_v26  ;;  %v80_v31 = vld [vmem:[%s2662_s1 + $0x1a8] sm:$0xff]  ;;  %v87_v32 = vld [vmem:[%s2662_s1 + $0x1e0] sm:$0xff]  ;;  %v81_v36 = vld [vmem:[%s2662_s1 + $0x1b0] sm:$0xff] }
  0x17   :  { %1610 = vmatprep.mubr.msk.f32.mxu1 %vm2037_vm0, %v2038_v8  ;;  %v88_v33 = vld [vmem:[%s2662_s1 + $0x1e8] sm:$0xff]  ;;  %v1920_v34 = vpack.c.bf16 %v80_v31, %v79_v30  ;;  %v82_v37 = vld [vmem:[%s2662_s1 + $0x1b8] sm:$0xff]  ;;  %v91_v42 = vld [vmem:[%s2662_s1 + $0x200] sm:$0xff] }
  0x18   :  { %1870 = vmatpush3.bf16.msra.mxu0 %v1869_v38  ;;  %v1932_v35 = vpack.c.bf16 %v88_v33, %v87_v32  ;;  %v89_v38 = vld [vmem:[%s2662_s1 + $0x1f0] sm:$0xff]  ;;  %v1923_v40 = vpack.c.bf16 %v82_v37, %v81_v36  ;;  %v92_v43 = vld [vmem:[%s2662_s1 + $0x208] sm:$0xff]  ;;  %v18_v48 = vld [vmem:[%s2663_s0 + $0x38] sm:$0xff] }
  0x19   :  { %1882 = vmatpush3.bf16.msra.mxu1 %v1881_v39  ;;  %1871 = vmatprep.subr.bf16.mxu0 %v2036_v0  ;;  %v90_v39 = vld [vmem:[%s2662_s1 + $0x1f8] sm:$0xff]  ;;  %v17_v46 = vld [vmem:[%s2663_s0 + $0x30] sm:$0xff]  ;;  %v1938_v47 = vpack.c.bf16 %v92_v43, %v91_v42  ;;  %v107_v5 = vld [vmem:[%s2662_s1 + $0x280] sm:$0xff] }
  0x1a   :  { %1883 = vmatprep.subr.bf16.mxu1 %v2036_v0  ;;  %v1935_v41 = vpack.c.bf16 %v90_v39, %v89_v38  ;;  %v101_v52 = vld [vmem:[%s2662_s1 + $0x250] sm:$0xff]  ;;  %v102_v53 = vld [vmem:[%s2662_s1 + $0x258] sm:$0xff]  ;;  %v108_v6 = vld [vmem:[%s2662_s1 + $0x288] sm:$0xff] }
  0x1b   :  { %v1953_v55 = vpack.c.bf16 %v102_v53, %v101_v52  ;;  %v97_v62 = vld [vmem:[%s2662_s1 + $0x230] sm:$0xff]  ;;  %v98_v63 = vld [vmem:[%s2662_s1 + $0x238] sm:$0xff]  ;;  %v19_v10 = vld [vmem:[%s2663_s0 + $0x40] sm:$0xff]  ;;  %v1962_v11 = vpack.c.bf16 %v108_v6, %v107_v5 }
  0x1c   :  { %1873 = vmatpush3.bf16.msra.mxu0 %v1872_v44  ;;  %v99_v44 = vld [vmem:[%s2662_s1 + $0x240] sm:$0xff]  ;;  %v1947_v3 = vpack.c.bf16 %v98_v63, %v97_v62  ;;  %v20_v12 = vld [vmem:[%s2663_s0 + $0x48] sm:$0xff]  ;;  %v117_v16 = vld [vmem:[%s2662_s1 + $0x2d0] sm:$0xff] }
  0x1d   :  { %1885 = vmatpush3.bf16.msra.mxu1 %v1884_v45  ;;  %1874 = vmatprep.subr.bf16.mxu0 %v2036_v0  ;;  %v100_v45 = vld [vmem:[%s2662_s1 + $0x248] sm:$0xff]  ;;  %v118_v17 = vld [vmem:[%s2662_s1 + $0x2d8] sm:$0xff]  ;;  %v113_v26 = vld [vmem:[%s2662_s1 + $0x2b0] sm:$0xff] }
  0x1e   :  { %1886 = vmatprep.subr.bf16.mxu1 %v2036_v0  ;;  %v1950_v49 = vpack.c.bf16 %v100_v45, %v99_v44  ;;  %v1977_v19 = vpack.c.bf16 %v118_v17, %v117_v16  ;;  %v114_v27 = vld [vmem:[%s2662_s1 + $0x2b8] sm:$0xff]  ;;  %v123_v32 = vld [vmem:[%s2662_s1 + $0x300] sm:$0xff]  ;;  %v124_v33 = vld [vmem:[%s2662_s1 + $0x308] sm:$0xff] }
  0x1f   :  { %v1971_v30 = vpack.c.bf16 %v114_v27, %v113_v26  ;;  %v21_v36 = vld [vmem:[%s2663_s0 + $0x50] sm:$0xff]  ;;  %v1986_v37 = vpack.c.bf16 %v124_v33, %v123_v32  ;;  %v22_v38 = vld [vmem:[%s2663_s0 + $0x58] sm:$0xff]  ;;  %v23_v62 = vld [vmem:[%s2663_s0 + $0x60] sm:$0xff] }
  0x20   :  { %1876 = vmatpush3.bf16.msra.mxu0 %v1875_v50  ;;  %v93_v50 = vld [vmem:[%s2662_s1 + $0x210] sm:$0xff]  ;;  %v134_v43 = vld [vmem:[%s2662_s1 + $0x358] sm:$0xff] }
  0x21   :  { %1888 = vmatpush3.bf16.msra.mxu1 %v1887_v51  ;;  %1889 = vmatprep.subr.bf16.mxu0 %v2036_v0  ;;  %v94_v51 = vld [vmem:[%s2662_s1 + $0x218] sm:$0xff]  ;;  %v133_v42 = vld [vmem:[%s2662_s1 + $0x350] sm:$0xff] }
  0x22   :  { %1901 = vmatprep.subr.bf16.mxu1 %v2036_v0  ;;  %v1941_v54 = vpack.c.bf16 %v94_v51, %v93_v50  ;;  %v2001_v45 = vpack.c.bf16 %v134_v43, %v133_v42  ;;  %v129_v52 = vld [vmem:[%s2662_s1 + $0x330] sm:$0xff]  ;;  %v130_v53 = vld [vmem:[%s2662_s1 + $0x338] sm:$0xff] }
  0x23   :  { %1592 = vmatmul.mubr.msk.f32.vlgmr.msra.gmra.mrb[2].mxu0 %vm155_vm1, %v13_v56  ;;  %v95_v56 = vld [vmem:[%s2662_s1 + $0x220] sm:$0xff]  ;;  %v149_v5 = vld [vmem:[%s2662_s1 + $0x3d0] sm:$0xff]  ;;  %v150_v6 = vld [vmem:[%s2662_s1 + $0x3d8] sm:$0xff] }
  0x24   :  { %1611 = vmatmul.mubr.msk.f32.vlgmr.msra.gmra.mrb[2].mxu1 %vm155_vm1, %v14_v58  ;;  %1891 = vmatpush3.bf16.msra.mxu0 %v1890_v57  ;;  %v96_v57 = vld [vmem:[%s2662_s1 + $0x228] sm:$0xff]  ;;  %v103_v58 = vld [vmem:[%s2662_s1 + $0x260] sm:$0xff]  ;;  %v145_v16 = vld [vmem:[%s2662_s1 + $0x3b0] sm:$0xff] }
  0x25   :  { %1903 = vmatpush3.bf16.msra.mxu1 %v1902_v59  ;;  %1892 = vmatprep.subr.bf16.mxu0 %v2036_v0  ;;  %v104_v59 = vld [vmem:[%s2662_s1 + $0x268] sm:$0xff]  ;;  %v1944_v60 = vpack.c.bf16 %v96_v57, %v95_v56  ;;  %v1995_v56 = vpack.c.bf16 %v130_v53, %v129_v52  ;;  %v146_v17 = vld [vmem:[%s2662_s1 + $0x3b8] sm:$0xff] }
  0x26   :  { %1904 = vmatprep.subr.bf16.mxu1 %v2036_v0  ;;  %1629 = vmatprep.mubr.msk.f32.mxu0 %vm2037_vm0, %v2038_v8  ;;  %v1956_v61 = vpack.c.bf16 %v104_v59, %v103_v58  ;;  %v139_v58 = vld [vmem:[%s2662_s1 + $0x380] sm:$0xff]  ;;  %v140_v59 = vld [vmem:[%s2662_s1 + $0x388] sm:$0xff] }
  0x27   :  { %1648 = vmatprep.mubr.msk.f32.mxu1 %vm2037_vm0, %v2038_v8  ;;  %v2010_v63 = vpack.c.bf16 %v140_v59, %v139_v58 }
  0x28   :  { %1894 = vmatpush3.bf16.msra.mxu0 %v1893_v1  ;;  %v105_v1 = vld [vmem:[%s2662_s1 + $0x270] sm:$0xff] }
  0x29   :  { %1906 = vmatpush3.bf16.msra.mxu1 %v1905_v2  ;;  %1895 = vmatprep.subr.bf16.mxu0 %v2036_v0  ;;  %v106_v2 = vld [vmem:[%s2662_s1 + $0x278] sm:$0xff] }
  0x2a   :  { %1907 = vmatprep.subr.bf16.mxu1 %v2036_v0  ;;  %v1959_v4 = vpack.c.bf16 %v106_v2, %v105_v1  ;;  %v24_v1 = vld [vmem:[%s2663_s0 + $0x68] sm:$0xff] }
  0x2c   :  { %1897 = vmatpush3.bf16.msra.mxu0 %v1896_v7  ;;  %v115_v7 = vld [vmem:[%s2662_s1 + $0x2c0] sm:$0xff] }
  0x2d   :  { %1909 = vmatpush3.bf16.msra.mxu1 %v1908_v9  ;;  %1898 = vmatprep.subr.bf16.mxu0 %v2036_v0  ;;  %v116_v9 = vld [vmem:[%s2662_s1 + $0x2c8] sm:$0xff] }
  0x2e   :  { %1910 = vmatprep.subr.bf16.mxu1 %v2036_v0  ;;  %v1974_v13 = vpack.c.bf16 %v116_v9, %v115_v7  ;;  %v2025_v9 = vpack.c.bf16 %v150_v6, %v149_v5 }
  0x30   :  { %1900 = vmatpush3.bf16.msra.mxu0 %v1899_v14  ;;  %v109_v14 = vld [vmem:[%s2662_s1 + $0x290] sm:$0xff] }
  0x31   :  { %1912 = vmatpush3.bf16.msra.mxu1 %v1911_v15  ;;  %1913 = vmatprep.subr.bf16.mxu0 %v2036_v0  ;;  %v110_v15 = vld [vmem:[%s2662_s1 + $0x298] sm:$0xff] }
  0x32   :  { %1925 = vmatprep.subr.bf16.mxu1 %v2036_v0  ;;  %v1965_v18 = vpack.c.bf16 %v110_v15, %v109_v14 }
  0x33   :  { %1630 = vmatmul.mubr.msk.f32.vlgmr.msra.gmra.mrb[4].mxu0 %vm155_vm1, %v15_v20  ;;  %v111_v20 = vld [vmem:[%s2662_s1 + $0x2a0] sm:$0xff] }
  0x34   :  { %1649 = vmatmul.mubr.msk.f32.vlgmr.msra.gmra.mrb[4].mxu1 %vm155_vm1, %v16_v22  ;;  %1915 = vmatpush3.bf16.msra.mxu0 %v1914_v21  ;;  %v112_v21 = vld [vmem:[%s2662_s1 + $0x2a8] sm:$0xff]  ;;  %v119_v22 = vld [vmem:[%s2662_s1 + $0x2e0] sm:$0xff] }
  0x35   :  { %1927 = vmatpush3.bf16.msra.mxu1 %v1926_v23  ;;  %1916 = vmatprep.subr.bf16.mxu0 %v2036_v0  ;;  %v120_v23 = vld [vmem:[%s2662_s1 + $0x2e8] sm:$0xff]  ;;  %v1968_v24 = vpack.c.bf16 %v112_v21, %v111_v20  ;;  %v25_v21 = vld [vmem:[%s2663_s0 + $0x70] sm:$0xff] }
  0x36   :  { %1928 = vmatprep.subr.bf16.mxu1 %v2036_v0  ;;  %1667 = vmatprep.mubr.msk.f32.mxu0 %vm2037_vm0, %v2038_v8  ;;  %v1980_v25 = vpack.c.bf16 %v120_v23, %v119_v22  ;;  %v26_v22 = vld [vmem:[%s2663_s0 + $0x78] sm:$0xff] }
  0x37   :  { %1686 = vmatprep.mubr.msk.f32.mxu1 %vm2037_vm0, %v2038_v8 }
  0x38   :  { %1918 = vmatpush3.bf16.msra.mxu0 %v1917_v28  ;;  %v121_v28 = vld [vmem:[%s2662_s1 + $0x2f0] sm:$0xff] }
  0x39   :  { %1930 = vmatpush3.bf16.msra.mxu1 %v1929_v29  ;;  %1919 = vmatprep.subr.bf16.mxu0 %v2036_v0  ;;  %v122_v29 = vld [vmem:[%s2662_s1 + $0x2f8] sm:$0xff] }
  0x3a   :  { %1931 = vmatprep.subr.bf16.mxu1 %v2036_v0  ;;  %v1983_v31 = vpack.c.bf16 %v122_v29, %v121_v28 }
  0x3c   :  { %1921 = vmatpush3.bf16.msra.mxu0 %v1920_v34  ;;  %v131_v34 = vld [vmem:[%s2662_s1 + $0x340] sm:$0xff] }
  0x3d   :  { %1933 = vmatpush3.bf16.msra.mxu1 %v1932_v35  ;;  %1922 = vmatprep.subr.bf16.mxu0 %v2036_v0  ;;  %v132_v35 = vld [vmem:[%s2662_s1 + $0x348] sm:$0xff] }
  0x3e   :  { %1934 = vmatprep.subr.bf16.mxu1 %v2036_v0  ;;  %v1998_v39 = vpack.c.bf16 %v132_v35, %v131_v34 }
  0x40   :  { %1924 = vmatpush3.bf16.msra.mxu0 %v1923_v40  ;;  %v125_v40 = vld [vmem:[%s2662_s1 + $0x310] sm:$0xff] }
  0x41   :  { %1936 = vmatpush3.bf16.msra.mxu1 %v1935_v41  ;;  %1937 = vmatprep.subr.bf16.mxu0 %v2036_v0  ;;  %v126_v41 = vld [vmem:[%s2662_s1 + $0x318] sm:$0xff] }
  0x42   :  { %1949 = vmatprep.subr.bf16.mxu1 %v2036_v0  ;;  %v1989_v44 = vpack.c.bf16 %v126_v41, %v125_v40 }
  0x43   :  { %1668 = vmatmul.mubr.msk.f32.vlgmr.msra.gmra.mrb[6].mxu0 %vm155_vm1, %v17_v46  ;;  %v127_v46 = vld [vmem:[%s2662_s1 + $0x320] sm:$0xff] }
  0x44   :  { %1687 = vmatmul.mubr.msk.f32.vlgmr.msra.gmra.mrb[6].mxu1 %vm155_vm1, %v18_v48  ;;  %1939 = vmatpush3.bf16.msra.mxu0 %v1938_v47  ;;  %v128_v47 = vld [vmem:[%s2662_s1 + $0x328] sm:$0xff]  ;;  %v135_v48 = vld [vmem:[%s2662_s1 + $0x360] sm:$0xff] }
  0x45   :  { %1951 = vmatpush3.bf16.msra.mxu1 %v1950_v49  ;;  %1940 = vmatprep.subr.bf16.mxu0 %v2036_v0  ;;  %v136_v49 = vld [vmem:[%s2662_s1 + $0x368] sm:$0xff]  ;;  %v1992_v50 = vpack.c.bf16 %v128_v47, %v127_v46 }
  0x46   :  { %1952 = vmatprep.subr.bf16.mxu1 %v2036_v0  ;;  %1705 = vmatprep.mubr.msk.f32.mxu0 %vm2037_vm0, %v2038_v8  ;;  %v2004_v51 = vpack.c.bf16 %v136_v49, %v135_v48 }
  0x47   :  { %1724 = vmatprep.mubr.msk.f32.mxu1 %vm2037_vm0, %v2038_v8 }
  0x48   :  { %1942 = vmatpush3.bf16.msra.mxu0 %v1941_v54  ;;  %v137_v54 = vld [vmem:[%s2662_s1 + $0x370] sm:$0xff] }
  0x49   :  { %1954 = vmatpush3.bf16.msra.mxu1 %v1953_v55  ;;  %1943 = vmatprep.subr.bf16.mxu0 %v2036_v0  ;;  %v138_v55 = vld [vmem:[%s2662_s1 + $0x378] sm:$0xff] }
  0x4a   :  { %1955 = vmatprep.subr.bf16.mxu1 %v2036_v0  ;;  %v2007_v57 = vpack.c.bf16 %v138_v55, %v137_v54 }
  0x4c   :  { %1945 = vmatpush3.bf16.msra.mxu0 %v1944_v60  ;;  %v147_v60 = vld [vmem:[%s2662_s1 + $0x3c0] sm:$0xff] }
  0x4d   :  { %1957 = vmatpush3.bf16.msra.mxu1 %v1956_v61  ;;  %1946 = vmatprep.subr.bf16.mxu0 %v2036_v0  ;;  %v148_v61 = vld [vmem:[%s2662_s1 + $0x3c8] sm:$0xff] }
  0x4e   :  { %1958 = vmatprep.subr.bf16.mxu1 %v2036_v0  ;;  %v2022_v2 = vpack.c.bf16 %v148_v61, %v147_v60 }
  0x50   :  { %1948 = vmatpush3.bf16.msra.mxu0 %v1947_v3  ;;  %v141_v3 = vld [vmem:[%s2662_s1 + $0x390] sm:$0xff] }
  0x51   :  { %1960 = vmatpush3.bf16.msra.mxu1 %v1959_v4  ;;  %1961 = vmatprep.subr.bf16.mxu0 %v2036_v0  ;;  %v142_v4 = vld [vmem:[%s2662_s1 + $0x398] sm:$0xff] }
  0x52   :  { %1973 = vmatprep.subr.bf16.mxu1 %v2036_v0  ;;  %v2013_v7 = vpack.c.bf16 %v142_v4, %v141_v3 }
  0x53   :  { %1706 = vmatmul.mubr.msk.f32.vlgmr.msra.gmra.mrb[8].mxu0 %vm155_vm1, %v19_v10  ;;  %v143_v10 = vld [vmem:[%s2662_s1 + $0x3a0] sm:$0xff] }
  0x54   :  { %1725 = vmatmul.mubr.msk.f32.vlgmr.msra.gmra.mrb[8].mxu1 %vm155_vm1, %v20_v12  ;;  %1963 = vmatpush3.bf16.msra.mxu0 %v1962_v11  ;;  %v144_v11 = vld [vmem:[%s2662_s1 + $0x3a8] sm:$0xff]  ;;  %v151_v12 = vld [vmem:[%s2662_s1 + $0x3e0] sm:$0xff] }
  0x55   :  { %1975 = vmatpush3.bf16.msra.mxu1 %v1974_v13  ;;  %1964 = vmatprep.subr.bf16.mxu0 %v2036_v0  ;;  %v152_v13 = vld [vmem:[%s2662_s1 + $0x3e8] sm:$0xff]  ;;  %v2016_v14 = vpack.c.bf16 %v144_v11, %v143_v10 }
  0x56   :  { %1976 = vmatprep.subr.bf16.mxu1 %v2036_v0  ;;  %1743 = vmatprep.mubr.msk.f32.mxu0 %vm2037_vm0, %v2038_v8  ;;  %v2028_v15 = vpack.c.bf16 %v152_v13, %v151_v12 }
  0x57   :  { %1762 = vmatprep.mubr.msk.f32.mxu1 %vm2037_vm0, %v2038_v8 }
  0x58   :  { %1966 = vmatpush3.bf16.msra.mxu0 %v1965_v18  ;;  %v154_v18 = vld [vmem:[%s2662_s1 + $0x3f8] sm:$0xff] }
  0x59   :  { %1978 = vmatpush3.bf16.msra.mxu1 %v1977_v19  ;;  %1967 = vmatprep.subr.bf16.mxu0 %v2036_v0  ;;  %v2019_v19 = vpack.c.bf16 %v146_v17, %v145_v16 }
  0x5a   :  { %1979 = vmatprep.subr.bf16.mxu1 %v2036_v0 }
  0x5c   :  { %1969 = vmatpush3.bf16.msra.mxu0 %v1968_v24 }
  0x5d   :  { %1981 = vmatpush3.bf16.msra.mxu1 %v1980_v25  ;;  %1970 = vmatprep.subr.bf16.mxu0 %v2036_v0 }
  0x5e   :  { %1982 = vmatprep.subr.bf16.mxu1 %v2036_v0 }
  0x60   :  { %1972 = vmatpush3.bf16.msra.mxu0 %v1971_v30 }
  0x61   :  { %1984 = vmatpush3.bf16.msra.mxu1 %v1983_v31  ;;  %1985 = vmatprep.subr.bf16.mxu0 %v2036_v0 }
  0x62   :  { %1997 = vmatprep.subr.bf16.mxu1 %v2036_v0 }
  0x63   :  { %1744 = vmatmul.mubr.msk.f32.vlgmr.msra.gmra.mrb[10].mxu0 %vm155_vm1, %v21_v36 }
  0x64   :  { %1763 = vmatmul.mubr.msk.f32.vlgmr.msra.gmra.mrb[10].mxu1 %vm155_vm1, %v22_v38  ;;  %1987 = vmatpush3.bf16.msra.mxu0 %v1986_v37 }
  0x65   :  { %1999 = vmatpush3.bf16.msra.mxu1 %v1998_v39  ;;  %1988 = vmatprep.subr.bf16.mxu0 %v2036_v0 }
  0x66   :  { %2000 = vmatprep.subr.bf16.mxu1 %v2036_v0  ;;  %1781 = vmatprep.mubr.msk.f32.mxu0 %vm2037_vm0, %v2038_v8 }
  0x67   :  { %1800 = vmatprep.mubr.msk.f32.mxu1 %vm2037_vm0, %v2038_v8 }
  0x68   :  { %1990 = vmatpush3.bf16.msra.mxu0 %v1989_v44 }
  0x69   :  { %2002 = vmatpush3.bf16.msra.mxu1 %v2001_v45  ;;  %1991 = vmatprep.subr.bf16.mxu0 %v2036_v0 }
  0x6a   :  { %2003 = vmatprep.subr.bf16.mxu1 %v2036_v0 }
  0x6c   :  { %1993 = vmatpush3.bf16.msra.mxu0 %v1992_v50 }
  0x6d   :  { %2005 = vmatpush3.bf16.msra.mxu1 %v2004_v51  ;;  %1994 = vmatprep.subr.bf16.mxu0 %v2036_v0 }
  0x6e   :  { %2006 = vmatprep.subr.bf16.mxu1 %v2036_v0 }
  0x70   :  { %1996 = vmatpush3.bf16.msra.mxu0 %v1995_v56 }
  0x71   :  { %2008 = vmatpush3.bf16.msra.mxu1 %v2007_v57  ;;  %2009 = vmatprep.subr.bf16.mxu0 %v2036_v0 }
  0x72   :  { %2021 = vmatprep.subr.bf16.mxu1 %v2036_v0 }
  0x73   :  { %1782 = vmatmul.mubr.msk.f32.vlgmr.msra.gmra.mrb[12].mxu0 %vm155_vm1, %v23_v62 }
  0x74   :  { %1801 = vmatmul.mubr.msk.f32.vlgmr.msra.gmra.mrb[12].mxu1 %vm155_vm1, %v24_v1  ;;  %2011 = vmatpush3.bf16.msra.mxu0 %v2010_v63 }
  0x75   :  { %2023 = vmatpush3.bf16.msra.mxu1 %v2022_v2  ;;  %2012 = vmatprep.subr.bf16.mxu0 %v2036_v0 }
  0x76   :  { %2024 = vmatprep.subr.bf16.mxu1 %v2036_v0  ;;  %1819 = vmatprep.mubr.msk.f32.mxu0 %vm2037_vm0, %v2038_v8 }
  0x77   :  { %1838 = vmatprep.mubr.msk.f32.mxu1 %vm2037_vm0, %v2038_v8  ;;  %v153_v8 = vld [vmem:[%s2662_s1 + $0x3f0] sm:$0xff] }
  0x78   :  { %2014 = vmatpush3.bf16.msra.mxu0 %v2013_v7  ;;  %v2031_v20 = vpack.c.bf16 %v154_v18, %v153_v8 }
  0x79   :  { %2026 = vmatpush3.bf16.msra.mxu1 %v2025_v9  ;;  %2015 = vmatprep.subr.bf16.mxu0 %v2036_v0 }
  0x7a   :  { %2027 = vmatprep.subr.bf16.mxu1 %v2036_v0 }
  0x7c   :  { %2017 = vmatpush3.bf16.msra.mxu0 %v2016_v14 }
  0x7d   :  { %2029 = vmatpush3.bf16.msra.mxu1 %v2028_v15  ;;  %2018 = vmatprep.subr.bf16.mxu0 %v2036_v0 }
  0x7e   :  { %2030 = vmatprep.subr.bf16.mxu1 %v2036_v0 }
  0x80   :  { %2020 = vmatpush3.bf16.msra.mxu0 %v2019_v19 }
  0x81   :  { %2032 = vmatpush3.bf16.msra.mxu1 %v2031_v20 }
  0x83   :  { %1820 = vmatmul.mubr.msk.f32.vlgmr.msra.gmra.mrb[14].mxu0 %vm155_vm1, %v25_v21 }
  0x84   :  { %1839 = vmatmul.mubr.msk.f32.vlgmr.msra.gmra.mrb[14].mxu1 %vm155_vm1, %v26_v22 }
  0xe6   :  { %v225_v23 = vpop.f32.mrb[0].mxu0 }
  0xe7   :  { %v1324_v24 = vmul.f32 0.125, %v225_v23  ;;  %v298_v25 = vpop.f32.mrb[0].mxu1  ;;  %v1555_v26 = vpop.f32.mrb[1].mxu0 }
  0xe8   :  { %v1325_v0 = vmul.f32 0.125, %v298_v25  ;;  %v1574_v27 = vpop.f32.mrb[1].mxu1 }
  0xe9   :  { %v1340_v28 = vmax.f32 %v1324_v24, 0.0 }
  0xea   :  { %v1341_v29 = vmax.f32 %v1325_v0, 0.0 }
  0xeb   :  { %1357 = vst.msk [vmem:[%s2664_s2] sm:$0xff] %vm1356_vm2, %v1340_v28 }
  0xec   :  { %1358 = vst.msk [vmem:[%s2664_s2 + $0x8] sm:$0xff] %vm1356_vm2, %v1341_v29 }
  0xf6   :  { %v371_v30 = vpop.f32.mrb[2].mxu0 }
  0xf7   :  { %v1326_v31 = vmul.f32 0.125, %v371_v30  ;;  %v444_v32 = vpop.f32.mrb[2].mxu1  ;;  %v1593_v33 = vpop.f32.mrb[3].mxu0 }
  0xf8   :  { %v1327_v34 = vmul.f32 0.125, %v444_v32  ;;  %v1612_v35 = vpop.f32.mrb[3].mxu1 }
  0xf9   :  { %v1342_v36 = vmax.f32 %v1326_v31, 0.0 }
  0xfa   :  { %v1343_v37 = vmax.f32 %v1327_v34, 0.0 }
  0xfb   :  { %1359 = vst.msk [vmem:[%s2664_s2 + $0x10] sm:$0xff] %vm1356_vm2, %v1342_v36 }
  0xfc   :  { %1360 = vst.msk [vmem:[%s2664_s2 + $0x18] sm:$0xff] %vm1356_vm2, %v1343_v37 }
 0x106   :  { %v517_v38 = vpop.f32.mrb[4].mxu0 }
 0x107   :  { %v1328_v39 = vmul.f32 0.125, %v517_v38  ;;  %v590_v40 = vpop.f32.mrb[4].mxu1  ;;  %v1631_v41 = vpop.f32.mrb[5].mxu0 }
 0x108   :  { %v1329_v42 = vmul.f32 0.125, %v590_v40  ;;  %v1650_v43 = vpop.f32.mrb[5].mxu1 }
 0x109   :  { %v1344_v44 = vmax.f32 %v1328_v39, 0.0 }
 0x10a   :  { %v1345_v45 = vmax.f32 %v1329_v42, 0.0 }
 0x10b   :  { %1361 = vst.msk [vmem:[%s2664_s2 + $0x20] sm:$0xff] %vm1356_vm2, %v1344_v44 }
 0x10c   :  { %1362 = vst.msk [vmem:[%s2664_s2 + $0x28] sm:$0xff] %vm1356_vm2, %v1345_v45 }
 0x116   :  { %v663_v46 = vpop.f32.mrb[6].mxu0 }
 0x117   :  { %v1330_v47 = vmul.f32 0.125, %v663_v46  ;;  %v736_v48 = vpop.f32.mrb[6].mxu1  ;;  %v1669_v49 = vpop.f32.mrb[7].mxu0 }
 0x118   :  { %v1331_v50 = vmul.f32 0.125, %v736_v48  ;;  %v1688_v51 = vpop.f32.mrb[7].mxu1 }
 0x119   :  { %v1346_v52 = vmax.f32 %v1330_v47, 0.0 }
 0x11a   :  { %v1347_v53 = vmax.f32 %v1331_v50, 0.0 }
 0x11b   :  { %1363 = vst.msk [vmem:[%s2664_s2 + $0x30] sm:$0xff] %vm1356_vm2, %v1346_v52 }
 0x11c   :  { %1364 = vst.msk [vmem:[%s2664_s2 + $0x38] sm:$0xff] %vm1356_vm2, %v1347_v53 }
 0x126   :  { %v809_v54 = vpop.f32.mrb[8].mxu0 }
 0x127   :  { %v1332_v55 = vmul.f32 0.125, %v809_v54  ;;  %v882_v56 = vpop.f32.mrb[8].mxu1  ;;  %v1707_v57 = vpop.f32.mrb[9].mxu0 }
 0x128   :  { %v1333_v58 = vmul.f32 0.125, %v882_v56  ;;  %v1726_v59 = vpop.f32.mrb[9].mxu1 }
 0x129   :  { %v1348_v60 = vmax.f32 %v1332_v55, 0.0 }
 0x12a   :  { %v1349_v61 = vmax.f32 %v1333_v58, 0.0 }
 0x12b   :  { %1365 = vst.msk [vmem:[%s2664_s2 + $0x40] sm:$0xff] %vm1356_vm2, %v1348_v60 }
 0x12c   :  { %1366 = vst.msk [vmem:[%s2664_s2 + $0x48] sm:$0xff] %vm1356_vm2, %v1349_v61 }
 0x136   :  { %v955_v62 = vpop.f32.mrb[10].mxu0 }
 0x137   :  { %v1334_v63 = vmul.f32 0.125, %v955_v62  ;;  %v1028_v1 = vpop.f32.mrb[10].mxu1  ;;  %v1745_v2 = vpop.f32.mrb[11].mxu0 }
 0x138   :  { %v1335_v3 = vmul.f32 0.125, %v1028_v1  ;;  %v1764_v4 = vpop.f32.mrb[11].mxu1 }
 0x139   :  { %v1350_v5 = vmax.f32 %v1334_v63, 0.0 }
 0x13a   :  { %v1351_v6 = vmax.f32 %v1335_v3, 0.0 }
 0x13b   :  { %1367 = vst.msk [vmem:[%s2664_s2 + $0x50] sm:$0xff] %vm1356_vm2, %v1350_v5 }
 0x13c   :  { %1368 = vst.msk [vmem:[%s2664_s2 + $0x58] sm:$0xff] %vm1356_vm2, %v1351_v6 }
 0x146   :  { %v1101_v7 = vpop.f32.mrb[12].mxu0 }
 0x147   :  { %v1336_v9 = vmul.f32 0.125, %v1101_v7  ;;  %v1174_v10 = vpop.f32.mrb[12].mxu1  ;;  %v1783_v11 = vpop.f32.mrb[13].mxu0 }
 0x148   :  { %v1337_v12 = vmul.f32 0.125, %v1174_v10  ;;  %v1802_v13 = vpop.f32.mrb[13].mxu1 }
 0x149   :  { %v1352_v14 = vmax.f32 %v1336_v9, 0.0 }
 0x14a   :  { %v1353_v15 = vmax.f32 %v1337_v12, 0.0 }
 0x14b   :  { %1369 = vst.msk [vmem:[%s2664_s2 + $0x60] sm:$0xff] %vm1356_vm2, %v1352_v14 }
 0x14c   :  { %1370 = vst.msk [vmem:[%s2664_s2 + $0x68] sm:$0xff] %vm1356_vm2, %v1353_v15 }
 0x156   :  { %v1247_v16 = vpop.f32.mrb[14].mxu0 }
 0x157   :  { %v1338_v17 = vmul.f32 0.125, %v1247_v16  ;;  %v1320_v8 = vpop.f32.mrb[14].mxu1  ;;  %v1821_v18 = vpop.f32.mrb[15].mxu0 }
 0x158   :  { %v1339_v19 = vmul.f32 0.125, %v1320_v8  ;;  %v1840_v20 = vpop.f32.mrb[15].mxu1 }
 0x159   :  { %v1354_v21 = vmax.f32 %v1338_v17, 0.0 }
 0x15a   :  { %v1355_v22 = vmax.f32 %v1339_v19, 0.0 }
 0x15b   :  { %1371 = vst.msk [vmem:[%s2664_s2 + $0x70] sm:$0xff] %vm1356_vm2, %v1354_v21 }
 0x15c   :  { %1372 = vst.msk [vmem:[%s2664_s2 + $0x78] sm:$0xff] %vm1356_vm2, %v1355_v22 }

</bundles_post_ra>
